<compile_context>
chip_gen: v5e
topology: v5e:2x2
jax: 0.10.0
libtpu: 0.0.40
codegen_flags: <defaults>
</compile_context>

<pallas_src>
import functools

import numpy as np
import jax
import jax.numpy as jnp
from jax.experimental import pallas as pl
from jax.experimental.pallas import tpu as pltpu

_SUB = 8                              # f32 sublane count
_VMEM_BUDGET = 48 * 1024 * 1024       # fits comfortably in v7x's 64 MiB physical VMEM


def _round_up(n, m):
    return ((n + m - 1) // m) * m


def _cdiv(a, b):
    return (a + b - 1) // b


def mlp2_kernel(x_ref, w1_ref, b1_ref, w2_ref, b2_ref, out_ref):
    # Cast activations to the weight (compute) dtype for the MXU; accumulate f32.
    x = x_ref[...].astype(w1_ref.dtype)
    h = jnp.dot(x, w1_ref[...], preferred_element_type=jnp.float32)
    h = jnp.maximum(h + b1_ref[...], 0.0)                 # f32 epilogue (v5e-safe)
    y = jnp.dot(h.astype(w2_ref.dtype), w2_ref[...],
                preferred_element_type=jnp.float32)
    out_ref[...] = (y + b2_ref[...]).astype(out_ref.dtype)


def _pick_tile_rows(B, D_in, H, D_out, x_bytes, w_bytes, out_bytes, max_tile_rows):
    """Batch tile with bounded ragged waste, >=2 (even) tiles for v7x, VMEM-capped."""
    nt = _cdiv(B, max_tile_rows)
    if nt == 1 and B >= 2 * _SUB:
        nt = 2                          # let megacore shard the batch on v7x
    if nt > 1 and nt % 2 == 1:
        nt += 1                         # even tile count keeps both v7x TCs balanced
    tb = min(_round_up(_cdiv(B, nt), _SUB), _round_up(max_tile_rows, _SUB))
    tb = max(tb, _SUB)

    def vmem_bytes(t):
        x_io = 2 * t * D_in * x_bytes           # x tile, double-buffered
        o_io = 2 * t * D_out * out_bytes        # out tile, double-buffered
        wts = (D_in * H + H * D_out) * w_bytes + (H + D_out) * 4
        live = t * H * 4 + t * D_out * 4        # f32 intermediates (h, y)
        return x_io + o_io + wts + live

    while tb > _SUB and vmem_bytes(tb) > _VMEM_BUDGET:
        tb = _round_up(tb // 2, _SUB)
    return tb, vmem_bytes(tb)


@functools.partial(
    jax.jit, static_argnames=("compute_dtype", "max_tile_rows", "force_pallas"))
def mlp2_128(x, w1, b1, w2, b2, *, compute_dtype=jnp.bfloat16,
             max_tile_rows=2048, force_pallas=False):
    """x: (B, D_in); w1: (D_in, 128); b1: (128,); w2: (128, D_out); b2: (D_out,).

    Weights are stored pre-transposed relative to nn.Linear so the kernel
    computes relu(x @ W1 + b1) @ W2 + b2.  Pass compute_dtype=jnp.float32 for
    exact f32 module semantics; default bf16 halves weight/activation bytes
    with f32 MXU accumulation.
    """
    B, D_in = x.shape
    H = w1.shape[1]          # 128
    D_out = w2.shape[1]
    out_dtype = x.dtype

    w1c = w1.astype(compute_dtype)
    w2c = w2.astype(compute_dtype)
    b1f = b1.astype(jnp.float32).reshape(1, H)
    b2f = b2.astype(jnp.float32).reshape(1, D_out)

    # Small-batch fast path: pallas_call launch/pipeline overhead dominates.
    if not force_pallas and B < 256:
        h = jnp.maximum(
            jnp.dot(x.astype(compute_dtype), w1c,
                    preferred_element_type=jnp.float32) + b1f, 0.0)
        y = jnp.dot(h.astype(compute_dtype), w2c,
                    preferred_element_type=jnp.float32) + b2f
        return y.astype(out_dtype)

    w_bytes = np.dtype(compute_dtype).itemsize
    TB, est = _pick_tile_rows(B, D_in, H, D_out,
                              x.dtype.itemsize, w_bytes, np.dtype(out_dtype).itemsize,
                              max_tile_rows)
    grid = (_cdiv(B, TB),)   # ragged last block handled by Pallas masking
    vmem_limit = int(min(_VMEM_BUDGET, max(4 * est, 16 * 1024 * 1024)))

    return pl.pallas_call(
        mlp2_kernel,
        out_shape=jax.ShapeDtypeStruct((B, D_out), out_dtype),
        grid=grid,
        in_specs=[
            pl.BlockSpec((TB, D_in), lambda i: (i, 0)),   # x tile marches over batch
            pl.BlockSpec((D_in, H), lambda i: (0, 0)),    # w1: VMEM-resident
            pl.BlockSpec((1, H), lambda i: (0, 0)),       # b1: VMEM-resident
            pl.BlockSpec((H, D_out), lambda i: (0, 0)),   # w2: VMEM-resident
            pl.BlockSpec((1, D_out), lambda i: (0, 0)),   # b2: VMEM-resident
        ],
        out_specs=pl.BlockSpec((TB, D_out), lambda i: (i, 0)),
        compiler_params=pltpu.CompilerParams(
            dimension_semantics=("parallel",),   # independent batch tiles (megacore)
            vmem_limit_bytes=vmem_limit,
        ),
    )(x, w1c, b1f, w2c, b2f)


if __name__ == "__main__":
    # Small shapes consistent with the module: batch=8, input_dim=32, output_dim=16.
    B, D_IN, HID, D_OUT = 8, 32, 128, 16

    key = jax.random.PRNGKey(0)
    kx, kw1, kb1, kw2, kb2 = jax.random.split(key, 5)

    x = jax.random.normal(kx, (B, D_IN), dtype=jnp.float32)
    # PyTorch Linear weights are (out, in); stored transposed for x @ W.
    w1 = jax.random.normal(kw1, (D_IN, HID), dtype=jnp.float32) * 0.05
    b1 = jax.random.normal(kb1, (HID,), dtype=jnp.float32) * 0.05
    w2 = jax.random.normal(kw2, (HID, D_OUT), dtype=jnp.float32) * 0.05
    b2 = jax.random.normal(kb2, (D_OUT,), dtype=jnp.float32) * 0.05

    # force_pallas=True so the Pallas kernel path (not the small-B fallback) runs.
    out = mlp2_128(x, w1, b1, w2, b2, force_pallas=True)
    jax.block_until_ready(out)

    # Matched-precision reference (bf16 matmul operands, f32 accum + epilogue).
    xb, w1b, w2b = (a.astype(jnp.bfloat16) for a in (x, w1, w2))
    h = jnp.maximum(jnp.dot(xb, w1b, preferred_element_type=jnp.float32) + b1, 0.0)
    ref = jnp.dot(h.astype(jnp.bfloat16), w2b,
                  preferred_element_type=jnp.float32) + b2
    # Full-f32 module reference (looser tolerance: bf16 matmul operands).
    ref_f32 = jnp.maximum(x @ w1 + b1, 0.0) @ w2 + b2

    assert out.shape == (B, D_OUT)
    assert out.dtype == jnp.float32
    assert jnp.allclose(out, ref, atol=2e-3, rtol=2e-3)
    assert jnp.allclose(out, ref_f32, atol=5e-2, rtol=5e-2)

    print("KERNEL_OK")
</pallas_src>

<mosaic_0001>
module attributes {stable_mosaic.version = 11 : i64} {
  func.func @mlp2_kernel(%arg0: i32, %arg1: memref<8x32xf32, #tpu.memory_space<vmem>>, %arg2: memref<32x128xbf16, #tpu.memory_space<vmem>>, %arg3: memref<1x128xf32, #tpu.memory_space<vmem>>, %arg4: memref<128x16xbf16, #tpu.memory_space<vmem>>, %arg5: memref<1x16xf32, #tpu.memory_space<vmem>>, %arg6: memref<8x16xf32, #tpu.memory_space<vmem>>) attributes {dimension_semantics = [#tpu.dimension_semantics<parallel>], iteration_bounds = array<i64: 1>, scalar_prefetch = 0 : i64, scratch_operands = 0 : i64, tpu.core_type = #tpu.core_type<tc>, window_params = [{transform_indices = @transform_0, window_bounds = array<i64: 8, 32>}, {pipeline_mode = #tpu.pipeline_mode<synchronous>, transform_indices = @transform_1, window_bounds = array<i64: 32, 128>}, {pipeline_mode = #tpu.pipeline_mode<synchronous>, transform_indices = @transform_2, window_bounds = array<i64: 1, 128>}, {pipeline_mode = #tpu.pipeline_mode<synchronous>, transform_indices = @transform_3, window_bounds = array<i64: 128, 16>}, {pipeline_mode = #tpu.pipeline_mode<synchronous>, transform_indices = @transform_4, window_bounds = array<i64: 1, 16>}, {transform_indices = @transform_5, window_bounds = array<i64: 8, 16>}]} {
    %c0 = arith.constant 0 : index
    %c0_0 = arith.constant 0 : index
    %0 = vector.load %arg1[%c0, %c0_0] : memref<8x32xf32, #tpu.memory_space<vmem>>, vector<8x32xf32>
    %1 = arith.truncf %0 : vector<8x32xf32> to vector<8x32xbf16>
    %c0_1 = arith.constant 0 : index
    %c0_2 = arith.constant 0 : index
    %2 = vector.load %arg2[%c0_1, %c0_2] : memref<32x128xbf16, #tpu.memory_space<vmem>>, vector<32x128xbf16>
    %cst = arith.constant dense<0.000000e+00> : vector<8x128xf32>
    %3 = tpu.matmul %1, %2, %cst {dimension_numbers = #tpu.dot_dimension_numbers<[1], [0], [0], [1], [0, 0, 1, 1], [], []>} : vector<8x32xbf16>, vector<32x128xbf16>, vector<8x128xf32> -> vector<8x128xf32>
    %c0_3 = arith.constant 0 : index
    %c0_4 = arith.constant 0 : index
    %4 = vector.load %arg3[%c0_3, %c0_4] : memref<1x128xf32, #tpu.memory_space<vmem>>, vector<1x128xf32>
    %5 = vector.broadcast %4 : vector<1x128xf32> to vector<8x128xf32>
    %6 = arith.addf %3, %5 : vector<8x128xf32>
    %cst_5 = arith.constant 0.000000e+00 : f32
    %7 = vector.broadcast %cst_5 : f32 to vector<8x128xf32>
    %8 = arith.maximumf %6, %7 : vector<8x128xf32>
    %9 = arith.truncf %8 : vector<8x128xf32> to vector<8x128xbf16>
    %c0_6 = arith.constant 0 : index
    %c0_7 = arith.constant 0 : index
    %10 = vector.load %arg4[%c0_6, %c0_7] : memref<128x16xbf16, #tpu.memory_space<vmem>>, vector<128x16xbf16>
    %cst_8 = arith.constant dense<0.000000e+00> : vector<8x16xf32>
    %11 = tpu.matmul %9, %10, %cst_8 {dimension_numbers = #tpu.dot_dimension_numbers<[1], [0], [0], [1], [0, 0, 1, 1], [], []>} : vector<8x128xbf16>, vector<128x16xbf16>, vector<8x16xf32> -> vector<8x16xf32>
    %c0_9 = arith.constant 0 : index
    %c0_10 = arith.constant 0 : index
    %12 = vector.load %arg5[%c0_9, %c0_10] : memref<1x16xf32, #tpu.memory_space<vmem>>, vector<1x16xf32>
    %13 = vector.broadcast %12 : vector<1x16xf32> to vector<8x16xf32>
    %14 = arith.addf %11, %13 : vector<8x16xf32>
    %c0_11 = arith.constant 0 : index
    %c0_12 = arith.constant 0 : index
    %15 = vector.load %arg6[%c0_11, %c0_12] : memref<8x16xf32, #tpu.memory_space<vmem>>, vector<8x16xf32>
    tpu.vector_store %arg6[%c0_11, %c0_12], %14 {strides = array<i32>} : memref<8x16xf32, #tpu.memory_space<vmem>>, vector<8x16xf32>,
    return
  }
  func.func @transform_0(%arg0: i32) -> (i32, i32) {
    %c0_i32 = arith.constant 0 : i32
    %c0_i32_0 = arith.constant 0 : i32
    return %arg0, %c0_i32 : i32, i32
  }
  func.func @transform_1(%arg0: i32) -> (i32, i32) {
    %c0_i32 = arith.constant 0 : i32
    %c0_i32_0 = arith.constant 0 : i32
    %c0_i32_1 = arith.constant 0 : i32
    return %c0_i32, %c0_i32_0 : i32, i32
  }
  func.func @transform_2(%arg0: i32) -> (i32, i32) {
    %c0_i32 = arith.constant 0 : i32
    %c0_i32_0 = arith.constant 0 : i32
    %c0_i32_1 = arith.constant 0 : i32
    return %c0_i32, %c0_i32_0 : i32, i32
  }
  func.func @transform_3(%arg0: i32) -> (i32, i32) {
    %c0_i32 = arith.constant 0 : i32
    %c0_i32_0 = arith.constant 0 : i32
    %c0_i32_1 = arith.constant 0 : i32
    return %c0_i32, %c0_i32_0 : i32, i32
  }
  func.func @transform_4(%arg0: i32) -> (i32, i32) {
    %c0_i32 = arith.constant 0 : i32
    %c0_i32_0 = arith.constant 0 : i32
    %c0_i32_1 = arith.constant 0 : i32
    return %c0_i32, %c0_i32_0 : i32, i32
  }
  func.func @transform_5(%arg0: i32) -> (i32, i32) {
    %c0_i32 = arith.constant 0 : i32
    %c0_i32_0 = arith.constant 0 : i32
    return %arg0, %c0_i32 : i32, i32
  }
}

</mosaic_0001>

<bundles_post_ra>
// kernel: mlp2_128.1
= control target key start
LH: loop header
LB: loop body
LE: loop exit
PB: predicated region body
PF: predicated region fallthrough
CT: control target
= control target key end

     0   :  { %s315_s0 = inlined_call_operand.vmem [shape: f32[8,32], index: 0, kind: input, shape index: {}]   ;;  %s316_s1 = inlined_call_operand.vmem [shape: bf16[32,128], index: 1, kind: input, shape index: {}]   ;;  %s317_s2 = inlined_call_operand.vmem [shape: f32[1,128], index: 2, kind: input, shape index: {}]   ;;  %s318_s3 = inlined_call_operand.vmem [shape: bf16[128,16], index: 3, kind: input, shape index: {}]   ;;  %s319_s4 = inlined_call_operand.vmem [shape: f32[1,16], index: 4, kind: input, shape index: {}]   ;;  %s320_s5 = inlined_call_operand.hbm [shape: f32[8,16], index: 5, kind: output, shape index: {}]  }
   0x1   :  { %v204_v0 = vld [vmem:[%s316_s1 + $0x8] sm:$0xff]  ;;  %v212_v1 = vld [vmem:[%s318_s3 + $0x38] sm:$0xff]  ;;  %v203_v2 = vld [vmem:[%s316_s1] sm:$0xff] }
   0x2   :  { %54 = vmatpush.bf16.msra.mxu0 %v204_v0  ;;  %v22_v3 = vld [vmem:[%s315_s0] sm:$0xff]  ;;  %131 = vmatpush.bf16.msra.mxu1 %v212_v1  ;;  %v211_v4 = vld [vmem:[%s318_s3 + $0x30] sm:$0xff] }
   0x3   :  { %10 = vsyncpa [#allocation3], 0  ;;  %v23_v5 = vpack.c.bf16 %v22_v3, %v22_v3  ;;  %vm44_vm0 = vcmask 261120   ;;  %v210_v6 = vld [vmem:[%s318_s3 + $0x28] sm:$0xff]  ;;  %v209_v7 = vld [vmem:[%s318_s3 + $0x20] sm:$0xff]  ;;  %s242_s17 = smov [#allocation2]  }
   0x4   :  { %v208_v8 = vld [vmem:[%s318_s3 + $0x18] sm:$0xff]  ;;  %v207_v9 = vld [vmem:[%s318_s3 + $0x10] sm:$0xff]  ;;  %v206_v10 = vld [vmem:[%s318_s3 + $0x8] sm:$0xff]  ;;  %s151_s18 = sshll.u32 %s242_s17, 4  ;;  %vm144_vm1 = vcmask 130048   ;;  %s152_s18 = int_to_ptr.vmem [resolvable:$true] %s151_s18 }
   0x5   :  { %v205_v11 = vld [vmem:[%s318_s3] sm:$0xff]  ;;  %s153_s3 = sshll.u32 %s320_s5, 4  ;;  %s154_s3 = int_to_ptr.hbm [resolvable:$true] %s153_s3 }
   0x6   :  { %55 = vmatpush.bf16.msra.mxu0 %v203_v2  ;;  %132 = vmatpush.bf16.msra.mxu1 %v211_v4  ;;  %v214_v12 = vld [vmem:[%s317_s2] ss:$0 sm:$0xff] }
   0x7   :  { %v215_v18 = vld [vmem:[%s319_s4] ss:$0 sm:$0xff] }
   0x9   :  { %170 = vmatmul.msk.bf16.vlgmr.msra.gmra.mxu0 %vm44_vm0, %v23_v5 }
   0xa   :  { %133 = vmatpush.bf16.msra.mxu1 %v210_v6 }
   0xe   :  { %134 = vmatpush.bf16.msra.mxu1 %v209_v7 }
  0x12   :  { %135 = vmatpush.bf16.msra.mxu1 %v208_v8 }
  0x16   :  { %136 = vmatpush.bf16.msra.mxu1 %v207_v9 }
  0x1a   :  { %137 = vmatpush.bf16.msra.mxu1 %v206_v10 }
  0x1e   :  { %138 = vmatpush.bf16.msra.mxu1 %v205_v11 }
  0x86   :  { %v57_v13 = vpop.f32.mrf.mxu0 }
  0x87   :  { %v58_v14 = vadd.f32 %v214_v12, %v57_v13 }
  0x89   :  { %v61_v15 = vmax.f32 %v58_v14, 0.0 }
  0x8b   :  { %v62_v16 = vpack.c.bf16 %v61_v15, %v61_v15 }
  0x8d   :  { %139 = vmatmul.bf16.vlgmr.msra.gmra.mxu1 %v62_v16 }
  0x8e   :  { %v59_v17 = vpop.f32.mrf.mxu0 }
 0x10a   :  { %v140_v19 = vpop.f32.mrf.mxu1 }
 0x10b   :  { %v141_v20 = vadd.f32 %v215_v18, %v140_v19 }
 0x10d   :  { %145 = vst.msk [vmem:[#allocation2] sm:$0xff] %vm144_vm1, %v141_v20 }
 0x10e   :  { %156 = dma.vmem_to_hbm [thread:$0]  %s152_s18, 128, %s154_s3, [#allocation3]  }
 0x112   :  { %v142_v21 = vpop.f32.mrf.mxu1 }
 0x113   :  { %240 = dma.done.wait [#allocation3], 128  }
 0x114   :  { %241 = vsyncadd [#allocation3], 4294967168 }
 0x115   :  { %161 = vsyncpa [#allocation3], 1 }

</bundles_post_ra>
